<compile_context>
chip_gen: v5e
topology: v5e:2x2
jax: 0.10.0
libtpu: 0.0.40
codegen_flags: <defaults>
</compile_context>

<pallas_src>
import functools

import jax
import jax.numpy as jnp
from jax.experimental import pallas as pl
from jax.experimental.pallas import tpu as pltpu

LANES = 128  # packed gate-block width (TPU lane tile)


# ---------------------------------------------------------------------------
# Kernel
# ---------------------------------------------------------------------------
def bigru_kernel(x2d_ref,            # (T*Bp, D)   time-major, flattened
                 wih_ref,            # (D, 2G)     [fwd | bwd] packed input-proj weight
                 bih_ref,            # (1, 2G)
                 whh_f_ref,          # (G, G)      forward recurrent weight (packed)
                 bhh_f_ref,          # (1, G)
                 bhh_b_ref,          # (1, G)      backward recurrent bias (whh_b eliminated)
                 wfc_f_ref,          # (G, Op)     FC head, forward half
                 wfc_b_ref,          # (G, Op)     FC head, backward half
                 bfc_ref,            # (1, Op)
                 out_ref,            # (Bp, Op)
                 *, hidden_size):
    TB = x2d_ref.shape[0]
    Bp = out_ref.shape[0]
    G = whh_f_ref.shape[0]
    T = TB // Bp
    H = hidden_size

    # One hoisted MXU pass covers the forward input projection for every
    # timestep AND the (single) backward projection.  Operands may be bf16;
    # accumulation is f32.
    proj = (jnp.dot(x2d_ref[...], wih_ref[...],
                    preferred_element_type=jnp.float32) + bih_ref[...])
    gi_f = proj[:, :G]                          # (T*Bp, G)  packed [n|z|r|pad]
    gi_b = proj[(T - 1) * Bp:, G:]              # (Bp, G)    only x[T-1] needed

    whh_f = whh_f_ref[...]
    # Bias broadcasts hoisted out of the loop (zeros per init_weights).
    bhh_f = jnp.broadcast_to(bhh_f_ref[...], (Bp, G))
    bhh_b = jnp.broadcast_to(bhh_b_ref[...], (Bp, G))

    # Keep only the real hidden lanes [0, H); padded lanes stay exactly 0.
    lane = jax.lax.broadcasted_iota(jnp.int32, (Bp, G), 1)
    h_keep = lane < H

    # Lane rotations (jnp.roll semantics: out[l] = in[(l - shift) % G]) that
    # bring r (lanes [2H,3H)) and z (lanes [H,2H)) onto the hidden lanes [0,H).
    shift_r = (G - 2 * H) % G
    shift_z = (G - H) % G

    def cell(gi, gh, h_old):
        """Packed GRU cell: gi/gh are [n|z|r|pad] pre-activations, h in lanes [0,H)."""
        sig = jax.nn.sigmoid(gi + gh)                 # one EUP vreg: r and z in place
        r_at_h = pltpu.roll(sig, shift_r, axis=1)     # r -> lanes [0,H)   (XLU)
        n = jnp.tanh(gi + r_at_h * gh)                # valid on lanes [0,H)
        z_at_h = pltpu.roll(sig, shift_z, axis=1)     # z -> lanes [0,H)   (XLU)
        h_new = n + z_at_h * (h_old - n)              # == (1-z)*n + z*h on [0,H)
        return jnp.where(h_keep, h_new, 0.0)

    zeros = jnp.zeros((Bp, G), jnp.float32)

    # ---- Forward recurrence.  Step 0 starts from h == 0 => gh == bhh_f
    # exactly, so its h@whh matmul is eliminated.  The remaining T-1 steps are
    # fully unrolled (T is small & static).
    # TODO(synk): for large T switch to lax.fori_loop over gi_f blocks with a
    # small unroll factor to bound vreg live ranges.
    h = cell(gi_f[:Bp, :], bhh_f, zeros)
    for t in range(1, T):
        gh = jnp.dot(h.astype(whh_f.dtype), whh_f,
                     preferred_element_type=jnp.float32) + bhh_f
        h = cell(gi_f[t * Bp:(t + 1) * Bp, :], gh, h)
    h_fwd = h

    # ---- Backward direction: gru_out[:, -1, H:] is a single backward step on
    # x[T-1] from h == 0 => gh == bhh_b exactly; no h@whh_b matmul, no whh_b.
    h_bwd = cell(gi_b, bhh_b, zeros)

    # ---- FC head: two dots summed (no lane-axis concat of h_fwd|h_bwd).
    out = (jnp.dot(h_fwd.astype(wfc_f_ref.dtype), wfc_f_ref[...],
                   preferred_element_type=jnp.float32)
           + jnp.dot(h_bwd.astype(wfc_b_ref.dtype), wfc_b_ref[...],
                     preferred_element_type=jnp.float32)
           + bfc_ref[...])
    out_ref[...] = out.astype(out_ref.dtype)     # (Bp, Op): lane-dense, unmasked vst


# ---------------------------------------------------------------------------
# Parameters (matching the PyTorch module's init_weights)
# ---------------------------------------------------------------------------
def _xavier_normal(key, shape):
    fan_in, fan_out = shape[0], shape[1]
    std = (2.0 / (fan_in + fan_out)) ** 0.5
    return std * jax.random.normal(key, shape, dtype=jnp.float32)


def make_bigru_params(key, input_size, hidden_size, output_size):
    ks = jax.random.split(key, 5)
    H3 = 3 * hidden_size
    return dict(
        wih_f=_xavier_normal(ks[0], (input_size, H3)),
        whh_f=_xavier_normal(ks[1], (hidden_size, H3)),
        bih_f=jnp.zeros((1, H3), jnp.float32),
        bhh_f=jnp.zeros((1, H3), jnp.float32),
        wih_b=_xavier_normal(ks[2], (input_size, H3)),
        whh_b=_xavier_normal(ks[3], (hidden_size, H3)),
        bih_b=jnp.zeros((1, H3), jnp.float32),
        bhh_b=jnp.zeros((1, H3), jnp.float32),
        wfc=_xavier_normal(ks[4], (2 * hidden_size, output_size)),
        bfc=jnp.zeros((1, output_size), jnp.float32),
    )


# ---------------------------------------------------------------------------
# Wrapper: layout plumbing (pack / pad / transpose) + pallas_call
# ---------------------------------------------------------------------------
def _round_up(x, m):
    return ((x + m - 1) // m) * m


@functools.partial(jax.jit,
                   static_argnames=("hidden_size", "output_size", "use_bf16"))
def bigru_forward(x, params, hidden_size, output_size, use_bf16=True):
    """x: (B, T, D) float32 -> (B, output_size) float32."""
    B, T, D = x.shape
    H, O = hidden_size, output_size
    G = LANES
    if 3 * H > G:
        # TODO(synk): large-H fallback (per-gate 128-aligned blocks, tiled whh).
        raise NotImplementedError("packed-gate kernel assumes 3*hidden_size <= 128")

    mxu_dtype = jnp.bfloat16 if use_bf16 else jnp.float32
    sub = 16 if use_bf16 else 8                 # sublane tile of the matmul dtype
    Bp = _round_up(max(B, sub), sub)
    Op = _round_up(O, 128)                      # lane-dense output width

    def pack_gates(w):
        # (..., 3H) in PyTorch gate order [r|z|n] -> (..., G) packed [n|z|r|0].
        r, z, n = w[..., :H], w[..., H:2 * H], w[..., 2 * H:]
        packed = jnp.concatenate([n, z, r], axis=-1)
        pad = [(0, 0)] * (w.ndim - 1) + [(0, G - 3 * H)]
        return jnp.pad(packed, pad)

    # Fused [forward | backward] input-projection weight: (D, 2G).
    wih = jnp.concatenate([pack_gates(params["wih_f"]),
                           pack_gates(params["wih_b"])], axis=-1).astype(mxu_dtype)
    bih = jnp.concatenate([pack_gates(params["bih_f"]),
                           pack_gates(params["bih_b"])], axis=-1)
    # Recurrent weight, forward direction only: the backward recurrent weight
    # is provably unused (single backward step from h == 0).
    whh_f = jnp.pad(pack_gates(params["whh_f"]),
                    ((0, G - H), (0, 0))).astype(mxu_dtype)
    bhh_f = pack_gates(params["bhh_f"])
    bhh_b = pack_gates(params["bhh_b"])

    wfc = params["wfc"]                                   # (2H, O): split + pad
    wfc_f = jnp.pad(wfc[:H], ((0, G - H), (0, Op - O))).astype(mxu_dtype)
    wfc_b = jnp.pad(wfc[H:], ((0, G - H), (0, Op - O))).astype(mxu_dtype)
    bfc = jnp.pad(params["bfc"], ((0, 0), (0, Op - O)))

    # TODO(synk): at production T*B*D, skip this wrapper transpose/pad and feed
    # x through a (t, b)-blocked BlockSpec index_map instead.
    x_tbd = jnp.transpose(x, (1, 0, 2))                   # (T, B, D) time-major
    x_pad = jnp.pad(x_tbd, ((0, 0), (0, Bp - B), (0, 0)))  # (T, Bp, D)
    x2d = x_pad.reshape(T * Bp, D).astype(mxu_dtype)

    itemsize = jnp.dtype(mxu_dtype).itemsize
    flops = (2 * T * Bp * D * 2 * G          # hoisted fwd+bwd input projection
             + 2 * (T - 1) * Bp * G * G      # recurrent h @ whh (steps 1..T-1 only)
             + 2 * 2 * Bp * G * Op)          # FC head
    transcendentals = 2 * (T + 1) * Bp * G   # one sigmoid + one tanh vreg per cell
    bytes_accessed = (itemsize * (T * Bp * D + D * 2 * G + G * G + 2 * G * Op)
                      + 4 * (2 * G + 2 * G + Op + Bp * Op))

    vmem = pl.BlockSpec(memory_space=pltpu.MemorySpace.VMEM)
    # TODO(synk): production sizes — grid over batch shards with
    # dimension_semantics=("parallel",) (v7x megacore), keep x / gi in pl.ANY
    # with a manual double buffer, and set vmem_limit_bytes explicitly
    # (v7x has only 64 MiB physical VMEM).
    out_pad = pl.pallas_call(
        functools.partial(bigru_kernel, hidden_size=H),
        out_shape=jax.ShapeDtypeStruct((Bp, Op), jnp.float32),
        in_specs=[vmem] * 9,
        out_specs=vmem,
        cost_estimate=pl.CostEstimate(flops=flops,
                                      transcendentals=transcendentals,
                                      bytes_accessed=bytes_accessed),
    )(x2d, wih, bih, whh_f, bhh_f, bhh_b, wfc_f, wfc_b, bfc)
    return out_pad[:B, :O]


# ---------------------------------------------------------------------------
# Pure-JAX reference (full bidirectional GRU) for checking
# ---------------------------------------------------------------------------
def bigru_reference(x, params, hidden_size):
    B, T, D = x.shape
    H = hidden_size

    def cell(x_t, h, wih, whh, bih, bhh):
        gi = x_t @ wih + bih
        gh = h @ whh + bhh
        r = jax.nn.sigmoid(gi[:, :H] + gh[:, :H])
        z = jax.nn.sigmoid(gi[:, H:2 * H] + gh[:, H:2 * H])
        n = jnp.tanh(gi[:, 2 * H:] + r * gh[:, 2 * H:])
        return (1.0 - z) * n + z * h

    h0 = jnp.zeros((B, H), jnp.float32)

    def scan_dir(xs, wih, whh, bih, bhh):
        def step(h, x_t):
            h = cell(x_t, h, wih, whh, bih, bhh)
            return h, h
        _, hs = jax.lax.scan(step, h0, xs)
        return hs  # (T, B, H)

    x_tbd = jnp.transpose(x, (1, 0, 2))
    hs_f = scan_dir(x_tbd, params["wih_f"], params["whh_f"],
                    params["bih_f"], params["bhh_f"])
    hs_b_rev = scan_dir(x_tbd[::-1], params["wih_b"], params["whh_b"],
                        params["bih_b"], params["bhh_b"])
    hs_b = hs_b_rev[::-1]
    last = jnp.concatenate([hs_f[-1], hs_b[-1]], axis=-1)   # gru_out[:, -1, :]
    return last @ params["wfc"] + params["bfc"]


if __name__ == "__main__":
    B, T, D, H, O = 2, 8, 16, 32, 8

    key = jax.random.PRNGKey(0)
    kx, kp = jax.random.split(key)
    x = jax.random.normal(kx, (B, T, D), dtype=jnp.float32)
    params = make_bigru_params(kp, D, H, O)

    ref = bigru_reference(x, params, H)

    # Exact-math validation of the structural changes (packed gates, rolls,
    # eliminated zero matmuls) with f32 MXU operands.
    out_f32 = jax.block_until_ready(bigru_forward(x, params, H, O, use_bf16=False))
    assert out_f32.shape == (B, O)
    assert jnp.allclose(out_f32, ref, rtol=1e-4, atol=1e-4), "f32 kernel mismatch"

    # Default fast path: bf16 MXU operands, f32 accumulation.
    out = jax.block_until_ready(bigru_forward(x, params, H, O))
    assert out.shape == (B, O)
    assert jnp.allclose(out, ref, rtol=5e-2, atol=5e-2), "bf16 kernel mismatch"

    print("KERNEL_OK")
</pallas_src>

<mosaic_0001>
module attributes {stable_mosaic.version = 11 : i64} {
  func.func @bigru_kernel(%arg0: memref<64x16xf32, #tpu.memory_space<vmem>>, %arg1: memref<16x256xf32, #tpu.memory_space<vmem>>, %arg2: memref<1x256xf32, #tpu.memory_space<vmem>>, %arg3: memref<128x128xf32, #tpu.memory_space<vmem>>, %arg4: memref<1x128xf32, #tpu.memory_space<vmem>>, %arg5: memref<1x128xf32, #tpu.memory_space<vmem>>, %arg6: memref<128x128xf32, #tpu.memory_space<vmem>>, %arg7: memref<128x128xf32, #tpu.memory_space<vmem>>, %arg8: memref<1x128xf32, #tpu.memory_space<vmem>>, %arg9: memref<8x128xf32, #tpu.memory_space<vmem>>) attributes {dimension_semantics = [], scalar_prefetch = 0 : i64, scratch_operands = 0 : i64, tpu.core_type = #tpu.core_type<tc>} {
    %c0 = arith.constant 0 : index
    %c0_0 = arith.constant 0 : index
    %0 = vector.load %arg0[%c0, %c0_0] : memref<64x16xf32, #tpu.memory_space<vmem>>, vector<64x16xf32>
    %c0_1 = arith.constant 0 : index
    %c0_2 = arith.constant 0 : index
    %1 = vector.load %arg1[%c0_1, %c0_2] : memref<16x256xf32, #tpu.memory_space<vmem>>, vector<16x256xf32>
    %cst = arith.constant dense<0.000000e+00> : vector<64x256xf32>
    %2 = tpu.matmul %0, %1, %cst {dimension_numbers = #tpu.dot_dimension_numbers<[1], [0], [0], [1], [0, 0, 1, 1], [], []>} : vector<64x16xf32>, vector<16x256xf32>, vector<64x256xf32> -> vector<64x256xf32>
    %c0_3 = arith.constant 0 : index
    %c0_4 = arith.constant 0 : index
    %3 = vector.load %arg2[%c0_3, %c0_4] : memref<1x256xf32, #tpu.memory_space<vmem>>, vector<1x256xf32>
    %4 = vector.broadcast %3 : vector<1x256xf32> to vector<64x256xf32>
    %5 = arith.addf %2, %4 : vector<64x256xf32>
    %6 = vector.extract_strided_slice %5 {offsets = [0, 0], sizes = [64, 128], strides = [1, 1]} : vector<64x256xf32> to vector<64x128xf32>
    %7 = vector.extract_strided_slice %5 {offsets = [56, 128], sizes = [8, 128], strides = [1, 1]} : vector<64x256xf32> to vector<8x128xf32>
    %c0_5 = arith.constant 0 : index
    %c0_6 = arith.constant 0 : index
    %8 = vector.load %arg3[%c0_5, %c0_6] : memref<128x128xf32, #tpu.memory_space<vmem>>, vector<128x128xf32>
    %c0_7 = arith.constant 0 : index
    %c0_8 = arith.constant 0 : index
    %9 = vector.load %arg4[%c0_7, %c0_8] : memref<1x128xf32, #tpu.memory_space<vmem>>, vector<1x128xf32>
    %10 = vector.shape_cast %9 : vector<1x128xf32> to vector<1x128xf32>
    %11 = vector.broadcast %10 : vector<1x128xf32> to vector<8x128xf32>
    %c0_9 = arith.constant 0 : index
    %c0_10 = arith.constant 0 : index
    %12 = vector.load %arg5[%c0_9, %c0_10] : memref<1x128xf32, #tpu.memory_space<vmem>>, vector<1x128xf32>
    %13 = vector.shape_cast %12 : vector<1x128xf32> to vector<1x128xf32>
    %14 = vector.broadcast %13 : vector<1x128xf32> to vector<8x128xf32>
    %15 = tpu.iota {dimensions = array<i32: 1>} : vector<8x128xi32>
    %c32_i32 = arith.constant 32 : i32
    %16 = vector.broadcast %c32_i32 : i32 to vector<8x128xi32>
    %17 = arith.cmpi slt, %15, %16 : vector<8x128xi32>
    %cst_11 = arith.constant 0.000000e+00 : f32
    %18 = vector.broadcast %cst_11 : f32 to vector<8x128xf32>
    %19 = vector.extract_strided_slice %6 {offsets = [0, 0], sizes = [8, 128], strides = [1, 1]} : vector<64x128xf32> to vector<8x128xf32>
    %20 = arith.addf %19, %11 : vector<8x128xf32>
    %21 = arith.negf %20 : vector<8x128xf32>
    %22 = math.exp %21 : vector<8x128xf32>
    %cst_12 = arith.constant 1.000000e+00 : f32
    %23 = vector.broadcast %cst_12 : f32 to vector<8x128xf32>
    %24 = arith.addf %23, %22 : vector<8x128xf32>
    %25 = arith.divf %23, %24 : vector<8x128xf32>
    %c64_i32 = arith.constant 64 : i32
    %26 = tpu.dynamic_rotate %25 by %c64_i32 dim 1 : vector<8x128xf32>, i32 -> vector<8x128xf32>
    %27 = arith.mulf %26, %11 : vector<8x128xf32>
    %28 = arith.addf %19, %27 : vector<8x128xf32>
    %29 = math.tanh %28 : vector<8x128xf32>
    %c96_i32 = arith.constant 96 : i32
    %30 = tpu.dynamic_rotate %25 by %c96_i32 dim 1 : vector<8x128xf32>, i32 -> vector<8x128xf32>
    %31 = arith.subf %18, %29 : vector<8x128xf32>
    %32 = arith.mulf %30, %31 : vector<8x128xf32>
    %33 = arith.addf %29, %32 : vector<8x128xf32>
    %cst_13 = arith.constant 0.000000e+00 : f32
    %34 = vector.broadcast %cst_13 : f32 to vector<8x128xf32>
    %35 = arith.select %17, %33, %34 : vector<8x128xi1>, vector<8x128xf32>
    %cst_14 = arith.constant dense<0.000000e+00> : vector<8x128xf32>
    %36 = tpu.matmul %35, %8, %cst_14 {dimension_numbers = #tpu.dot_dimension_numbers<[1], [0], [0], [1], [0, 0, 1, 1], [], []>} : vector<8x128xf32>, vector<128x128xf32>, vector<8x128xf32> -> vector<8x128xf32>
    %37 = arith.addf %36, %11 : vector<8x128xf32>
    %38 = vector.extract_strided_slice %6 {offsets = [8, 0], sizes = [8, 128], strides = [1, 1]} : vector<64x128xf32> to vector<8x128xf32>
    %39 = arith.addf %38, %37 : vector<8x128xf32>
    %40 = arith.negf %39 : vector<8x128xf32>
    %41 = math.exp %40 : vector<8x128xf32>
    %cst_15 = arith.constant 1.000000e+00 : f32
    %42 = vector.broadcast %cst_15 : f32 to vector<8x128xf32>
    %43 = arith.addf %42, %41 : vector<8x128xf32>
    %44 = arith.divf %42, %43 : vector<8x128xf32>
    %c64_i32_16 = arith.constant 64 : i32
    %45 = tpu.dynamic_rotate %44 by %c64_i32_16 dim 1 : vector<8x128xf32>, i32 -> vector<8x128xf32>
    %46 = arith.mulf %45, %37 : vector<8x128xf32>
    %47 = arith.addf %38, %46 : vector<8x128xf32>
    %48 = math.tanh %47 : vector<8x128xf32>
    %c96_i32_17 = arith.constant 96 : i32
    %49 = tpu.dynamic_rotate %44 by %c96_i32_17 dim 1 : vector<8x128xf32>, i32 -> vector<8x128xf32>
    %50 = arith.subf %35, %48 : vector<8x128xf32>
    %51 = arith.mulf %49, %50 : vector<8x128xf32>
    %52 = arith.addf %48, %51 : vector<8x128xf32>
    %cst_18 = arith.constant 0.000000e+00 : f32
    %53 = vector.broadcast %cst_18 : f32 to vector<8x128xf32>
    %54 = arith.select %17, %52, %53 : vector<8x128xi1>, vector<8x128xf32>
    %cst_19 = arith.constant dense<0.000000e+00> : vector<8x128xf32>
    %55 = tpu.matmul %54, %8, %cst_19 {dimension_numbers = #tpu.dot_dimension_numbers<[1], [0], [0], [1], [0, 0, 1, 1], [], []>} : vector<8x128xf32>, vector<128x128xf32>, vector<8x128xf32> -> vector<8x128xf32>
    %56 = arith.addf %55, %11 : vector<8x128xf32>
    %57 = vector.extract_strided_slice %6 {offsets = [16, 0], sizes = [8, 128], strides = [1, 1]} : vector<64x128xf32> to vector<8x128xf32>
    %58 = arith.addf %57, %56 : vector<8x128xf32>
    %59 = arith.negf %58 : vector<8x128xf32>
    %60 = math.exp %59 : vector<8x128xf32>
    %cst_20 = arith.constant 1.000000e+00 : f32
    %61 = vector.broadcast %cst_20 : f32 to vector<8x128xf32>
    %62 = arith.addf %61, %60 : vector<8x128xf32>
    %63 = arith.divf %61, %62 : vector<8x128xf32>
    %c64_i32_21 = arith.constant 64 : i32
    %64 = tpu.dynamic_rotate %63 by %c64_i32_21 dim 1 : vector<8x128xf32>, i32 -> vector<8x128xf32>
    %65 = arith.mulf %64, %56 : vector<8x128xf32>
    %66 = arith.addf %57, %65 : vector<8x128xf32>
    %67 = math.tanh %66 : vector<8x128xf32>
    %c96_i32_22 = arith.constant 96 : i32
    %68 = tpu.dynamic_rotate %63 by %c96_i32_22 dim 1 : vector<8x128xf32>, i32 -> vector<8x128xf32>
    %69 = arith.subf %54, %67 : vector<8x128xf32>
    %70 = arith.mulf %68, %69 : vector<8x128xf32>
    %71 = arith.addf %67, %70 : vector<8x128xf32>
    %cst_23 = arith.constant 0.000000e+00 : f32
    %72 = vector.broadcast %cst_23 : f32 to vector<8x128xf32>
    %73 = arith.select %17, %71, %72 : vector<8x128xi1>, vector<8x128xf32>
    %cst_24 = arith.constant dense<0.000000e+00> : vector<8x128xf32>
    %74 = tpu.matmul %73, %8, %cst_24 {dimension_numbers = #tpu.dot_dimension_numbers<[1], [0], [0], [1], [0, 0, 1, 1], [], []>} : vector<8x128xf32>, vector<128x128xf32>, vector<8x128xf32> -> vector<8x128xf32>
    %75 = arith.addf %74, %11 : vector<8x128xf32>
    %76 = vector.extract_strided_slice %6 {offsets = [24, 0], sizes = [8, 128], strides = [1, 1]} : vector<64x128xf32> to vector<8x128xf32>
    %77 = arith.addf %76, %75 : vector<8x128xf32>
    %78 = arith.negf %77 : vector<8x128xf32>
    %79 = math.exp %78 : vector<8x128xf32>
    %cst_25 = arith.constant 1.000000e+00 : f32
    %80 = vector.broadcast %cst_25 : f32 to vector<8x128xf32>
    %81 = arith.addf %80, %79 : vector<8x128xf32>
    %82 = arith.divf %80, %81 : vector<8x128xf32>
    %c64_i32_26 = arith.constant 64 : i32
    %83 = tpu.dynamic_rotate %82 by %c64_i32_26 dim 1 : vector<8x128xf32>, i32 -> vector<8x128xf32>
    %84 = arith.mulf %83, %75 : vector<8x128xf32>
    %85 = arith.addf %76, %84 : vector<8x128xf32>
    %86 = math.tanh %85 : vector<8x128xf32>
    %c96_i32_27 = arith.constant 96 : i32
    %87 = tpu.dynamic_rotate %82 by %c96_i32_27 dim 1 : vector<8x128xf32>, i32 -> vector<8x128xf32>
    %88 = arith.subf %73, %86 : vector<8x128xf32>
    %89 = arith.mulf %87, %88 : vector<8x128xf32>
    %90 = arith.addf %86, %89 : vector<8x128xf32>
    %cst_28 = arith.constant 0.000000e+00 : f32
    %91 = vector.broadcast %cst_28 : f32 to vector<8x128xf32>
    %92 = arith.select %17, %90, %91 : vector<8x128xi1>, vector<8x128xf32>
    %cst_29 = arith.constant dense<0.000000e+00> : vector<8x128xf32>
    %93 = tpu.matmul %92, %8, %cst_29 {dimension_numbers = #tpu.dot_dimension_numbers<[1], [0], [0], [1], [0, 0, 1, 1], [], []>} : vector<8x128xf32>, vector<128x128xf32>, vector<8x128xf32> -> vector<8x128xf32>
    %94 = arith.addf %93, %11 : vector<8x128xf32>
    %95 = vector.extract_strided_slice %6 {offsets = [32, 0], sizes = [8, 128], strides = [1, 1]} : vector<64x128xf32> to vector<8x128xf32>
    %96 = arith.addf %95, %94 : vector<8x128xf32>
    %97 = arith.negf %96 : vector<8x128xf32>
    %98 = math.exp %97 : vector<8x128xf32>
    %cst_30 = arith.constant 1.000000e+00 : f32
    %99 = vector.broadcast %cst_30 : f32 to vector<8x128xf32>
    %100 = arith.addf %99, %98 : vector<8x128xf32>
    %101 = arith.divf %99, %100 : vector<8x128xf32>
    %c64_i32_31 = arith.constant 64 : i32
    %102 = tpu.dynamic_rotate %101 by %c64_i32_31 dim 1 : vector<8x128xf32>, i32 -> vector<8x128xf32>
    %103 = arith.mulf %102, %94 : vector<8x128xf32>
    %104 = arith.addf %95, %103 : vector<8x128xf32>
    %105 = math.tanh %104 : vector<8x128xf32>
    %c96_i32_32 = arith.constant 96 : i32
    %106 = tpu.dynamic_rotate %101 by %c96_i32_32 dim 1 : vector<8x128xf32>, i32 -> vector<8x128xf32>
    %107 = arith.subf %92, %105 : vector<8x128xf32>
    %108 = arith.mulf %106, %107 : vector<8x128xf32>
    %109 = arith.addf %105, %108 : vector<8x128xf32>
    %cst_33 = arith.constant 0.000000e+00 : f32
    %110 = vector.broadcast %cst_33 : f32 to vector<8x128xf32>
    %111 = arith.select %17, %109, %110 : vector<8x128xi1>, vector<8x128xf32>
    %cst_34 = arith.constant dense<0.000000e+00> : vector<8x128xf32>
    %112 = tpu.matmul %111, %8, %cst_34 {dimension_numbers = #tpu.dot_dimension_numbers<[1], [0], [0], [1], [0, 0, 1, 1], [], []>} : vector<8x128xf32>, vector<128x128xf32>, vector<8x128xf32> -> vector<8x128xf32>
    %113 = arith.addf %112, %11 : vector<8x128xf32>
    %114 = vector.extract_strided_slice %6 {offsets = [40, 0], sizes = [8, 128], strides = [1, 1]} : vector<64x128xf32> to vector<8x128xf32>
    %115 = arith.addf %114, %113 : vector<8x128xf32>
    %116 = arith.negf %115 : vector<8x128xf32>
    %117 = math.exp %116 : vector<8x128xf32>
    %cst_35 = arith.constant 1.000000e+00 : f32
    %118 = vector.broadcast %cst_35 : f32 to vector<8x128xf32>
    %119 = arith.addf %118, %117 : vector<8x128xf32>
    %120 = arith.divf %118, %119 : vector<8x128xf32>
    %c64_i32_36 = arith.constant 64 : i32
    %121 = tpu.dynamic_rotate %120 by %c64_i32_36 dim 1 : vector<8x128xf32>, i32 -> vector<8x128xf32>
    %122 = arith.mulf %121, %113 : vector<8x128xf32>
    %123 = arith.addf %114, %122 : vector<8x128xf32>
    %124 = math.tanh %123 : vector<8x128xf32>
    %c96_i32_37 = arith.constant 96 : i32
    %125 = tpu.dynamic_rotate %120 by %c96_i32_37 dim 1 : vector<8x128xf32>, i32 -> vector<8x128xf32>
    %126 = arith.subf %111, %124 : vector<8x128xf32>
    %127 = arith.mulf %125, %126 : vector<8x128xf32>
    %128 = arith.addf %124, %127 : vector<8x128xf32>
    %cst_38 = arith.constant 0.000000e+00 : f32
    %129 = vector.broadcast %cst_38 : f32 to vector<8x128xf32>
    %130 = arith.select %17, %128, %129 : vector<8x128xi1>, vector<8x128xf32>
    %cst_39 = arith.constant dense<0.000000e+00> : vector<8x128xf32>
    %131 = tpu.matmul %130, %8, %cst_39 {dimension_numbers = #tpu.dot_dimension_numbers<[1], [0], [0], [1], [0, 0, 1, 1], [], []>} : vector<8x128xf32>, vector<128x128xf32>, vector<8x128xf32> -> vector<8x128xf32>
    %132 = arith.addf %131, %11 : vector<8x128xf32>
    %133 = vector.extract_strided_slice %6 {offsets = [48, 0], sizes = [8, 128], strides = [1, 1]} : vector<64x128xf32> to vector<8x128xf32>
    %134 = arith.addf %133, %132 : vector<8x128xf32>
    %135 = arith.negf %134 : vector<8x128xf32>
    %136 = math.exp %135 : vector<8x128xf32>
    %cst_40 = arith.constant 1.000000e+00 : f32
    %137 = vector.broadcast %cst_40 : f32 to vector<8x128xf32>
    %138 = arith.addf %137, %136 : vector<8x128xf32>
    %139 = arith.divf %137, %138 : vector<8x128xf32>
    %c64_i32_41 = arith.constant 64 : i32
    %140 = tpu.dynamic_rotate %139 by %c64_i32_41 dim 1 : vector<8x128xf32>, i32 -> vector<8x128xf32>
    %141 = arith.mulf %140, %132 : vector<8x128xf32>
    %142 = arith.addf %133, %141 : vector<8x128xf32>
    %143 = math.tanh %142 : vector<8x128xf32>
    %c96_i32_42 = arith.constant 96 : i32
    %144 = tpu.dynamic_rotate %139 by %c96_i32_42 dim 1 : vector<8x128xf32>, i32 -> vector<8x128xf32>
    %145 = arith.subf %130, %143 : vector<8x128xf32>
    %146 = arith.mulf %144, %145 : vector<8x128xf32>
    %147 = arith.addf %143, %146 : vector<8x128xf32>
    %cst_43 = arith.constant 0.000000e+00 : f32
    %148 = vector.broadcast %cst_43 : f32 to vector<8x128xf32>
    %149 = arith.select %17, %147, %148 : vector<8x128xi1>, vector<8x128xf32>
    %cst_44 = arith.constant dense<0.000000e+00> : vector<8x128xf32>
    %150 = tpu.matmul %149, %8, %cst_44 {dimension_numbers = #tpu.dot_dimension_numbers<[1], [0], [0], [1], [0, 0, 1, 1], [], []>} : vector<8x128xf32>, vector<128x128xf32>, vector<8x128xf32> -> vector<8x128xf32>
    %151 = arith.addf %150, %11 : vector<8x128xf32>
    %152 = vector.extract_strided_slice %6 {offsets = [56, 0], sizes = [8, 128], strides = [1, 1]} : vector<64x128xf32> to vector<8x128xf32>
    %153 = arith.addf %152, %151 : vector<8x128xf32>
    %154 = arith.negf %153 : vector<8x128xf32>
    %155 = math.exp %154 : vector<8x128xf32>
    %cst_45 = arith.constant 1.000000e+00 : f32
    %156 = vector.broadcast %cst_45 : f32 to vector<8x128xf32>
    %157 = arith.addf %156, %155 : vector<8x128xf32>
    %158 = arith.divf %156, %157 : vector<8x128xf32>
    %c64_i32_46 = arith.constant 64 : i32
    %159 = tpu.dynamic_rotate %158 by %c64_i32_46 dim 1 : vector<8x128xf32>, i32 -> vector<8x128xf32>
    %160 = arith.mulf %159, %151 : vector<8x128xf32>
    %161 = arith.addf %152, %160 : vector<8x128xf32>
    %162 = math.tanh %161 : vector<8x128xf32>
    %c96_i32_47 = arith.constant 96 : i32
    %163 = tpu.dynamic_rotate %158 by %c96_i32_47 dim 1 : vector<8x128xf32>, i32 -> vector<8x128xf32>
    %164 = arith.subf %149, %162 : vector<8x128xf32>
    %165 = arith.mulf %163, %164 : vector<8x128xf32>
    %166 = arith.addf %162, %165 : vector<8x128xf32>
    %cst_48 = arith.constant 0.000000e+00 : f32
    %167 = vector.broadcast %cst_48 : f32 to vector<8x128xf32>
    %168 = arith.select %17, %166, %167 : vector<8x128xi1>, vector<8x128xf32>
    %169 = arith.addf %7, %14 : vector<8x128xf32>
    %170 = arith.negf %169 : vector<8x128xf32>
    %171 = math.exp %170 : vector<8x128xf32>
    %cst_49 = arith.constant 1.000000e+00 : f32
    %172 = vector.broadcast %cst_49 : f32 to vector<8x128xf32>
    %173 = arith.addf %172, %171 : vector<8x128xf32>
    %174 = arith.divf %172, %173 : vector<8x128xf32>
    %c64_i32_50 = arith.constant 64 : i32
    %175 = tpu.dynamic_rotate %174 by %c64_i32_50 dim 1 : vector<8x128xf32>, i32 -> vector<8x128xf32>
    %176 = arith.mulf %175, %14 : vector<8x128xf32>
    %177 = arith.addf %7, %176 : vector<8x128xf32>
    %178 = math.tanh %177 : vector<8x128xf32>
    %c96_i32_51 = arith.constant 96 : i32
    %179 = tpu.dynamic_rotate %174 by %c96_i32_51 dim 1 : vector<8x128xf32>, i32 -> vector<8x128xf32>
    %180 = arith.subf %18, %178 : vector<8x128xf32>
    %181 = arith.mulf %179, %180 : vector<8x128xf32>
    %182 = arith.addf %178, %181 : vector<8x128xf32>
    %cst_52 = arith.constant 0.000000e+00 : f32
    %183 = vector.broadcast %cst_52 : f32 to vector<8x128xf32>
    %184 = arith.select %17, %182, %183 : vector<8x128xi1>, vector<8x128xf32>
    %c0_53 = arith.constant 0 : index
    %c0_54 = arith.constant 0 : index
    %185 = vector.load %arg6[%c0_53, %c0_54] : memref<128x128xf32, #tpu.memory_space<vmem>>, vector<128x128xf32>
    %cst_55 = arith.constant dense<0.000000e+00> : vector<8x128xf32>
    %186 = tpu.matmul %168, %185, %cst_55 {dimension_numbers = #tpu.dot_dimension_numbers<[1], [0], [0], [1], [0, 0, 1, 1], [], []>} : vector<8x128xf32>, vector<128x128xf32>, vector<8x128xf32> -> vector<8x128xf32>
    %c0_56 = arith.constant 0 : index
    %c0_57 = arith.constant 0 : index
    %187 = vector.load %arg7[%c0_56, %c0_57] : memref<128x128xf32, #tpu.memory_space<vmem>>, vector<128x128xf32>
    %cst_58 = arith.constant dense<0.000000e+00> : vector<8x128xf32>
    %188 = tpu.matmul %184, %187, %cst_58 {dimension_numbers = #tpu.dot_dimension_numbers<[1], [0], [0], [1], [0, 0, 1, 1], [], []>} : vector<8x128xf32>, vector<128x128xf32>, vector<8x128xf32> -> vector<8x128xf32>
    %189 = arith.addf %186, %188 : vector<8x128xf32>
    %c0_59 = arith.constant 0 : index
    %c0_60 = arith.constant 0 : index
    %190 = vector.load %arg8[%c0_59, %c0_60] : memref<1x128xf32, #tpu.memory_space<vmem>>, vector<1x128xf32>
    %191 = vector.broadcast %190 : vector<1x128xf32> to vector<8x128xf32>
    %192 = arith.addf %189, %191 : vector<8x128xf32>
    %c0_61 = arith.constant 0 : index
    %c0_62 = arith.constant 0 : index
    %193 = vector.load %arg9[%c0_61, %c0_62] : memref<8x128xf32, #tpu.memory_space<vmem>>, vector<8x128xf32>
    tpu.vector_store %arg9[%c0_61, %c0_62], %192 {strides = array<i32>} : memref<8x128xf32, #tpu.memory_space<vmem>>, vector<8x128xf32>,
    return
  }
}

</mosaic_0001>

<bundles_post_ra>
// kernel: bigru_forward.1
= control target key start
LH: loop header
LB: loop body
LE: loop exit
PB: predicated region body
PF: predicated region fallthrough
CT: control target
= control target key end

     0   :  { %vm50_vm0 = vcmask 130048   ;;  %s773_s10 = smov 64   ;;  %s774_s11 = smov 96   ;;  %v174_v42 = vlaneseq  ;;  %s1316_s1 = inlined_call_operand.vmem [shape: f32[16,256], index: 1, kind: input, shape index: {}]   ;;  %s1317_s0 = inlined_call_operand.vmem [shape: f32[64,16], index: 0, kind: input, shape index: {}]   ;;  %s1318_s4 = inlined_call_operand.vmem [shape: f32[1,128], index: 4, kind: input, shape index: {}]   ;;  %s1319_s2 = inlined_call_operand.vmem [shape: f32[1,256], index: 2, kind: input, shape index: {}]   ;;  %s1320_s3 = inlined_call_operand.vmem [shape: f32[128,128], index: 3, kind: input, shape index: {}]   ;;  %s1321_s5 = inlined_call_operand.vmem [shape: f32[1,128], index: 5, kind: input, shape index: {}]   ;;  %s1322_s7 = inlined_call_operand.vmem [shape: f32[128,128], index: 7, kind: input, shape index: {}]   ;;  %s1323_s8 = inlined_call_operand.vmem [shape: f32[1,128], index: 8, kind: input, shape index: {}]   ;;  %s1324_s6 = inlined_call_operand.vmem [shape: f32[128,128], index: 6, kind: input, shape index: {}]   ;;  %s1325_s9 = inlined_call_operand.vmem [shape: f32[8,128], index: 9, kind: output, shape index: {}]  }
   0x1   :  { %v42_v0 = vld [vmem:[%s1316_s1 + $0x10] sm:$0xff]  ;;  %v40_v1 = vld [vmem:[%s1316_s1] sm:$0xff]  ;;  %v859_v10 = vld [vmem:[%s1320_s3 + $0x78] sm:$0xff] }
   0x2   :  { %89 = vmatpush.msra.mxu0 %v42_v0  ;;  %v834_v2 = vld [vmem:[%s1317_s0] sm:$0xff]  ;;  %712 = vmatpush.msra.mxu1 %v42_v0  ;;  %v864_v11 = vld [vmem:[%s1320_s3 + $0x70] sm:$0xff]  ;;  %v871_v12 = vld [vmem:[%s1320_s3 + $0x68] sm:$0xff]  ;;  %v1021_v44 = vand.u32 127, %v174_v42 }
   0x3   :  { %v841_v3 = vld [vmem:[%s1319_s2] sm:$0x3]  ;;  %208 = vmatpush.msra.mxu2 %v859_v10  ;;  %259 = vmatpush.msra.mxu3 %v859_v10  ;;  %v887_v16 = vld [vmem:[%s1320_s3 + $0x58] sm:$0xff]  ;;  %v895_v17 = vld [vmem:[%s1320_s3 + $0x50] sm:$0xff] }
   0x4   :  { %90 = vmatpush.msra.mxu0 %v40_v1  ;;  %713 = vmatpush.msra.mxu1 %v40_v1  ;;  %v844_v4 = vperm.slane %v841_v3, 0  ;;  %v849_v5 = vld [vmem:[%s1318_s4] ss:$0 sm:$0xff]  ;;  %v903_v18 = vld [vmem:[%s1320_s3 + $0x48] sm:$0xff]  ;;  %v924_v30 = vld [vmem:[%s1320_s3 + $0x38] sm:$0xff]  ;;  %vm176_vm5 = vcmp.lt.s32.totalorder %v1021_v44, 32 }
   0x5   :  { %678 = vmatmul.msk.f32.vlgmr.msra.gmra.mxu0 %vm50_vm0, %v834_v2  ;;  %209 = vmatpush.msra.mxu2 %v864_v11  ;;  %v879_v14 = vld [vmem:[%s1320_s3 + $0x60] sm:$0xff]  ;;  %v932_v31 = vld [vmem:[%s1320_s3 + $0x30] sm:$0xff]  ;;  %v939_v32 = vld [vmem:[%s1320_s3 + $0x28] sm:$0xff] }
   0x6   :  { %412 = vmatpush.msrb.mxu0 %v859_v10  ;;  %260 = vmatpush.msra.mxu3 %v864_v11  ;;  %v917_v29 = vld [vmem:[%s1320_s3 + $0x40] sm:$0xff]  ;;  %v956_v34 = vld [vmem:[%s1320_s3 + $0x18] sm:$0xff]  ;;  %v964_v35 = vld [vmem:[%s1320_s3 + $0x10] sm:$0xff] }
   0x7   :  { %210 = vmatpush.msra.mxu2 %v871_v12  ;;  %v948_v33 = vld [vmem:[%s1320_s3 + $0x20] sm:$0xff]  ;;  %v972_v36 = vld [vmem:[%s1320_s3 + $0x8] sm:$0xff] }
   0x8   :  { %413 = vmatpush.msrb.mxu0 %v864_v11  ;;  %261 = vmatpush.msra.mxu3 %v871_v12  ;;  %v980_v37 = vld [vmem:[%s1320_s3] sm:$0xff]  ;;  %v988_v38 = vld [vmem:[%s1317_s0 + $0x8] sm:$0xff] }
   0x9   :  { %211 = vmatpush.msra.mxu2 %v879_v14 }
   0xa   :  { %414 = vmatpush.msrb.mxu0 %v871_v12  ;;  %262 = vmatpush.msra.mxu3 %v879_v14 }
   0xb   :  { %212 = vmatpush.msra.mxu2 %v887_v16 }
   0xc   :  { %415 = vmatpush.msrb.mxu0 %v879_v14  ;;  %263 = vmatpush.msra.mxu3 %v887_v16 }
   0xd   :  { %213 = vmatpush.msra.mxu2 %v895_v17  ;;  %679 = vmatmul.msk.f32.gmra.mxu0 %vm50_vm0, %v988_v38 }
   0xe   :  { %416 = vmatpush.msrb.mxu0 %v887_v16  ;;  %264 = vmatpush.msra.mxu3 %v895_v17 }
   0xf   :  { %214 = vmatpush.msra.mxu2 %v903_v18 }
  0x10   :  { %417 = vmatpush.msrb.mxu0 %v895_v17  ;;  %265 = vmatpush.msra.mxu3 %v903_v18 }
  0x11   :  { %215 = vmatpush.msra.mxu2 %v917_v29 }
  0x12   :  { %418 = vmatpush.msrb.mxu0 %v903_v18  ;;  %266 = vmatpush.msra.mxu3 %v917_v29 }
  0x13   :  { %216 = vmatpush.msra.mxu2 %v924_v30 }
  0x14   :  { %419 = vmatpush.msrb.mxu0 %v917_v29  ;;  %267 = vmatpush.msra.mxu3 %v924_v30 }
  0x15   :  { %217 = vmatpush.msra.mxu2 %v932_v31 }
  0x16   :  { %420 = vmatpush.msrb.mxu0 %v924_v30  ;;  %268 = vmatpush.msra.mxu3 %v932_v31 }
  0x17   :  { %218 = vmatpush.msra.mxu2 %v939_v32 }
  0x18   :  { %421 = vmatpush.msrb.mxu0 %v932_v31  ;;  %269 = vmatpush.msra.mxu3 %v939_v32 }
  0x19   :  { %219 = vmatpush.msra.mxu2 %v948_v33 }
  0x1a   :  { %422 = vmatpush.msrb.mxu0 %v939_v32  ;;  %270 = vmatpush.msra.mxu3 %v948_v33 }
  0x1b   :  { %220 = vmatpush.msra.mxu2 %v956_v34 }
  0x1c   :  { %423 = vmatpush.msrb.mxu0 %v948_v33  ;;  %271 = vmatpush.msra.mxu3 %v956_v34 }
  0x1d   :  { %221 = vmatpush.msra.mxu2 %v964_v35 }
  0x1e   :  { %424 = vmatpush.msrb.mxu0 %v956_v34  ;;  %272 = vmatpush.msra.mxu3 %v964_v35 }
  0x1f   :  { %222 = vmatpush.msra.mxu2 %v972_v36 }
  0x20   :  { %425 = vmatpush.msrb.mxu0 %v964_v35  ;;  %273 = vmatpush.msra.mxu3 %v972_v36 }
  0x21   :  { %223 = vmatpush.msra.mxu2 %v980_v37 }
  0x22   :  { %426 = vmatpush.msrb.mxu0 %v972_v36  ;;  %274 = vmatpush.msra.mxu3 %v980_v37 }
  0x23   :  { %310 = vmatpush.msrb.mxu2 %v859_v10 }
  0x24   :  { %361 = vmatpush.msrb.mxu3 %v859_v10  ;;  %427 = vmatpush.msrb.mxu0 %v980_v37 }
  0x25   :  { %311 = vmatpush.msrb.mxu2 %v864_v11 }
  0x26   :  { %362 = vmatpush.msrb.mxu3 %v864_v11 }
  0x27   :  { %312 = vmatpush.msrb.mxu2 %v871_v12 }
  0x28   :  { %363 = vmatpush.msrb.mxu3 %v871_v12 }
  0x29   :  { %313 = vmatpush.msrb.mxu2 %v879_v14 }
  0x2a   :  { %364 = vmatpush.msrb.mxu3 %v879_v14 }
  0x2b   :  { %314 = vmatpush.msrb.mxu2 %v887_v16 }
  0x2c   :  { %365 = vmatpush.msrb.mxu3 %v887_v16 }
  0x2d   :  { %315 = vmatpush.msrb.mxu2 %v895_v17 }
  0x2e   :  { %366 = vmatpush.msrb.mxu3 %v895_v17 }
  0x2f   :  { %316 = vmatpush.msrb.mxu2 %v903_v18 }
  0x30   :  { %367 = vmatpush.msrb.mxu3 %v903_v18 }
  0x31   :  { %317 = vmatpush.msrb.mxu2 %v917_v29 }
  0x32   :  { %368 = vmatpush.msrb.mxu3 %v917_v29 }
  0x33   :  { %318 = vmatpush.msrb.mxu2 %v924_v30 }
  0x34   :  { %369 = vmatpush.msrb.mxu3 %v924_v30 }
  0x35   :  { %319 = vmatpush.msrb.mxu2 %v932_v31 }
  0x36   :  { %370 = vmatpush.msrb.mxu3 %v932_v31 }
  0x37   :  { %320 = vmatpush.msrb.mxu2 %v939_v32 }
  0x38   :  { %371 = vmatpush.msrb.mxu3 %v939_v32 }
  0x39   :  { %321 = vmatpush.msrb.mxu2 %v948_v33 }
  0x3a   :  { %372 = vmatpush.msrb.mxu3 %v948_v33 }
  0x3b   :  { %322 = vmatpush.msrb.mxu2 %v956_v34 }
  0x3c   :  { %373 = vmatpush.msrb.mxu3 %v956_v34 }
  0x3d   :  { %323 = vmatpush.msrb.mxu2 %v964_v35 }
  0x3e   :  { %374 = vmatpush.msrb.mxu3 %v964_v35 }
  0x3f   :  { %324 = vmatpush.msrb.mxu2 %v972_v36 }
  0x40   :  { %375 = vmatpush.msrb.mxu3 %v972_v36 }
  0x41   :  { %325 = vmatpush.msrb.mxu2 %v980_v37 }
  0x42   :  { %376 = vmatpush.msrb.mxu3 %v980_v37 }
  0x82   :  { %v92_v6 = vpop.f32.mrf.mxu0 }
  0x83   :  { %v852_v7 = vadd.f32 %v92_v6, %v844_v4 }
  0x85   :  { %v177_v8 = vadd.f32 %v849_v5, %v852_v7 }
  0x87   :  { %v694_v9 = vmul.f32 -1.442695, %v177_v8 }
  0x89   :  { %719 = vpow2.f32 %v694_v9 }
  0x8a   :  { %v95_v49 = vpop.f32.mrf.mxu0 }
  0x8b   :  { %v96_v50 = vadd.f32 %v95_v49, %v844_v4 }
  0x8f   :  { %v720_v13 = vpop.eup %719 }
  0x90   :  { %v181_v15 = vadd.f32 1.0, %v720_v13 }
  0x92   :  { %721 = vrcp.f32 %v181_v15  ;;  %v193_v22 = vand.u32 2147483648, %v181_v15  ;;  %v191_v24 = vand.u32 2147483647, %v181_v15  ;;  %vm187_vm2 = vweird.f32 %v181_v15 }
  0x94   :  { %v194_v26 = vor.u32 1.1754944e-38, %v193_v22  ;;  %vm192_vm4 = vcmp.eq.f32.partialorder %v191_v24, 8.507059e+37 }
  0x98   :  { %v722_v19 = vpop.eup %721 }
  0x99   :  { %v183_v20 = vmul.f32 %v722_v19, %v181_v15  ;;  %vm188_vm1 = vweird.f32 %v722_v19 }
  0x9a   :  { %vm189_vm3 = vmor %vm187_vm2, %vm188_vm1 }
  0x9b   :  { %v184_v21 = vsub.f32 1.0, %v183_v20 }
  0x9d   :  { %v185_v23 = vmul.f32 %v722_v19, %v184_v21 }
  0x9f   :  { %v186_v25 = vadd.f32 %v722_v19, %v185_v23 }
  0xa1   :  { %v190_v27 = vsel %vm189_vm3, %v722_v19, %v186_v25 }
  0xa2   :  { %v195_v28 = vsel %vm192_vm4, %v194_v26, %v190_v27 }
  0xa3   :  { %197 = vrot.lane.b32.xlu0 %v195_v28, %s773_s10 }
  0xab   :  { %202 = vrot.lane.b32.xlu0 %v195_v28, %s774_s11 }
 0x115   :  { %v198_v39 = vpop.permute.xlu0 %197 }
 0x116   :  { %v199_v40 = vmul.f32 %v849_v5, %v198_v39 }
 0x118   :  { %v200_v41 = vadd.f32 %v199_v40, %v852_v7  ;;  %v1055_v7 = vld [vmem:[%s1317_s0 + $0x10] sm:$0xff] }
 0x119   :  { %680 = vmatmul.msk.f32.gmra.mxu0 %vm50_vm0, %v1055_v7 }
 0x11a   :  { %723 = vtanh.f32 %v200_v41 }
 0x11d   :  { %v203_v46 = vpop.permute.xlu0 %202 }
 0x120   :  { %v724_v43 = vpop.eup %723 }
 0x121   :  { %v204_v45 = vsub.f32 0.0, %v724_v43 }
 0x123   :  { %v205_v47 = vmul.f32 %v204_v45, %v203_v46 }
 0x125   :  { %v206_v48 = vadd.f32 %v724_v43, %v205_v47 }
 0x127   :  { %695 = vmatmul.msk.f32.vlgmr.msra.gmra.mxu2 %vm176_vm5, %v206_v48  ;;  %v207_v19 = vsel %vm176_vm5, %v206_v48, 0.0 }
 0x128   :  { %514 = vmatpush.msra.mxu2 %v859_v10 }
 0x12a   :  { %515 = vmatpush.msra.mxu2 %v864_v11 }
 0x12c   :  { %516 = vmatpush.msra.mxu2 %v871_v12 }
 0x12e   :  { %517 = vmatpush.msra.mxu2 %v879_v14 }
 0x130   :  { %518 = vmatpush.msra.mxu2 %v887_v16 }
 0x132   :  { %519 = vmatpush.msra.mxu2 %v895_v17 }
 0x134   :  { %520 = vmatpush.msra.mxu2 %v903_v18 }
 0x136   :  { %521 = vmatpush.msra.mxu2 %v917_v29 }
 0x138   :  { %522 = vmatpush.msra.mxu2 %v924_v30 }
 0x13a   :  { %523 = vmatpush.msra.mxu2 %v932_v31 }
 0x13c   :  { %524 = vmatpush.msra.mxu2 %v939_v32 }
 0x13e   :  { %525 = vmatpush.msra.mxu2 %v948_v33 }
 0x140   :  { %526 = vmatpush.msra.mxu2 %v956_v34 }
 0x142   :  { %527 = vmatpush.msra.mxu2 %v964_v35 }
 0x144   :  { %528 = vmatpush.msra.mxu2 %v972_v36 }
 0x146   :  { %529 = vmatpush.msra.mxu2 %v980_v37 }
 0x196   :  { %v98_v24 = vpop.f32.mrf.mxu0 }
 0x197   :  { %v99_v25 = vadd.f32 %v98_v24, %v844_v4 }
 0x1aa   :  { %v225_v51 = vpop.f32.mrf.mxu2 }
 0x1ab   :  { %v226_v52 = vadd.f32 %v849_v5, %v225_v51 }
 0x1ad   :  { %v228_v53 = vadd.f32 %v226_v52, %v96_v50 }
 0x1af   :  { %v696_v54 = vmul.f32 -1.442695, %v228_v53  ;;  %v1070_v53 = vld [vmem:[%s1317_s0 + $0x18] sm:$0xff] }
 0x1b0   :  { %681 = vmatmul.msk.f32.gmra.mxu0 %vm50_vm0, %v1070_v53 }
 0x1b1   :  { %725 = vpow2.f32 %v696_v54 }
 0x1b7   :  { %v726_v55 = vpop.eup %725 }
 0x1b8   :  { %v232_v56 = vadd.f32 1.0, %v726_v55 }
 0x1ba   :  { %727 = vrcp.f32 %v232_v56  ;;  %v244_v60 = vand.u32 2147483648, %v232_v56  ;;  %v242_v62 = vand.u32 2147483647, %v232_v56  ;;  %vm238_vm7 = vweird.f32 %v232_v56 }
 0x1bc   :  { %v245_v0 = vor.u32 1.1754944e-38, %v244_v60  ;;  %vm243_vm9 = vcmp.eq.f32.partialorder %v242_v62, 8.507059e+37 }
 0x1c0   :  { %v728_v57 = vpop.eup %727 }
 0x1c1   :  { %v234_v58 = vmul.f32 %v728_v57, %v232_v56  ;;  %vm239_vm6 = vweird.f32 %v728_v57 }
 0x1c2   :  { %vm240_vm8 = vmor %vm238_vm7, %vm239_vm6 }
 0x1c3   :  { %v235_v59 = vsub.f32 1.0, %v234_v58 }
 0x1c5   :  { %v236_v61 = vmul.f32 %v728_v57, %v235_v59 }
 0x1c7   :  { %v237_v63 = vadd.f32 %v728_v57, %v236_v61 }
 0x1c9   :  { %v241_v1 = vsel %vm240_vm8, %v728_v57, %v237_v63 }
 0x1ca   :  { %v246_v6 = vsel %vm243_vm9, %v245_v0, %v241_v1 }
 0x1cb   :  { %248 = vrot.lane.b32.xlu1 %v246_v6, %s773_s10 }
 0x1d3   :  { %253 = vrot.lane.b32.xlu1 %v246_v6, %s774_s11 }
 0x22d   :  { %v101_v63 = vpop.f32.mrf.mxu0 }
 0x22e   :  { %v102_v0 = vadd.f32 %v101_v63, %v844_v4 }
 0x23d   :  { %v249_v8 = vpop.permute.xlu1 %248 }
 0x23e   :  { %v250_v9 = vmul.f32 %v249_v8, %v226_v52 }
 0x240   :  { %v251_v13 = vadd.f32 %v250_v9, %v96_v50 }
 0x242   :  { %729 = vtanh.f32 %v251_v13 }
 0x245   :  { %v254_v21 = vpop.permute.xlu1 %253 }
 0x248   :  { %v730_v15 = vpop.eup %729 }
 0x249   :  { %v255_v20 = vsub.f32 %v207_v19, %v730_v15 }
 0x24b   :  { %v256_v22 = vmul.f32 %v255_v20, %v254_v21 }
 0x24d   :  { %v257_v23 = vadd.f32 %v730_v15, %v256_v22 }
 0x24f   :  { %697 = vmatmul.msk.f32.vlgmr.msra.gmra.mxu3 %vm176_vm5, %v257_v23  ;;  %v258_v58 = vsel %vm176_vm5, %v257_v23, 0.0 }
 0x2d2   :  { %v276_v26 = vpop.f32.mrf.mxu3 }
 0x2d3   :  { %v277_v27 = vadd.f32 %v849_v5, %v276_v26 }
 0x2d5   :  { %v279_v28 = vadd.f32 %v277_v27, %v99_v25 }
 0x2d7   :  { %v698_v39 = vmul.f32 -1.442695, %v279_v28 }
 0x2d9   :  { %731 = vpow2.f32 %v698_v39  ;;  %v1085_v39 = vld [vmem:[%s1317_s0 + $0x20] sm:$0xff] }
 0x2da   :  { %682 = vmatmul.msk.f32.gmra.mxu0 %vm50_vm0, %v1085_v39 }
 0x2df   :  { %v732_v40 = vpop.eup %731 }
 0x2e0   :  { %v283_v41 = vadd.f32 1.0, %v732_v40 }
 0x2e2   :  { %733 = vrcp.f32 %v283_v41  ;;  %v295_v46 = vand.u32 2147483648, %v283_v41  ;;  %v293_v48 = vand.u32 2147483647, %v283_v41  ;;  %vm289_vm11 = vweird.f32 %v283_v41 }
 0x2e4   :  { %v296_v50 = vor.u32 1.1754944e-38, %v295_v46  ;;  %vm294_vm13 = vcmp.eq.f32.partialorder %v293_v48, 8.507059e+37 }
 0x2e8   :  { %v734_v42 = vpop.eup %733 }
 0x2e9   :  { %v285_v43 = vmul.f32 %v734_v42, %v283_v41  ;;  %vm290_vm10 = vweird.f32 %v734_v42 }
 0x2ea   :  { %vm291_vm12 = vmor %vm289_vm11, %vm290_vm10 }
 0x2eb   :  { %v286_v45 = vsub.f32 1.0, %v285_v43 }
 0x2ed   :  { %v287_v47 = vmul.f32 %v734_v42, %v286_v45 }
 0x2ef   :  { %v288_v49 = vadd.f32 %v734_v42, %v287_v47 }
 0x2f1   :  { %v292_v51 = vsel %vm291_vm12, %v734_v42, %v288_v49 }
 0x2f2   :  { %v297_v52 = vsel %vm294_vm13, %v296_v50, %v292_v51 }
 0x2f3   :  { %299 = vrot.lane.b32.xlu2 %v297_v52, %s773_s10 }
 0x2fb   :  { %304 = vrot.lane.b32.xlu2 %v297_v52, %s774_s11 }
 0x34d   :  { %v300_v54 = vpop.permute.xlu2 %299 }
 0x34e   :  { %v301_v55 = vmul.f32 %v300_v54, %v277_v27 }
 0x350   :  { %v302_v56 = vadd.f32 %v301_v55, %v99_v25 }
 0x352   :  { %735 = vtanh.f32 %v302_v56 }
 0x355   :  { %v305_v60 = vpop.permute.xlu2 %304 }
 0x357   :  { %v104_v50 = vpop.f32.mrf.mxu0 }
 0x358   :  { %v736_v57 = vpop.eup %735  ;;  %v105_v51 = vadd.f32 %v104_v50, %v844_v4 }
 0x359   :  { %v306_v59 = vsub.f32 %v258_v58, %v736_v57 }
 0x35b   :  { %v307_v61 = vmul.f32 %v306_v59, %v305_v60 }
 0x35d   :  { %v308_v62 = vadd.f32 %v736_v57, %v307_v61 }
 0x35f   :  { %699 = vmatmul.msk.f32.vlgmr.msrb.gmra.mxu2 %vm176_vm5, %v308_v62  ;;  %v309_v45 = vsel %vm176_vm5, %v308_v62, 0.0 }
 0x3e2   :  { %v327_v1 = vpop.f32.mrf.mxu2 }
 0x3e3   :  { %v328_v6 = vadd.f32 %v849_v5, %v327_v1 }
 0x3e5   :  { %v330_v8 = vadd.f32 %v328_v6, %v102_v0 }
 0x3e7   :  { %v700_v9 = vmul.f32 -1.442695, %v330_v8 }
 0x3e9   :  { %737 = vpow2.f32 %v700_v9 }
 0x3ef   :  { %v738_v13 = vpop.eup %737 }
 0x3f0   :  { %v334_v15 = vadd.f32 1.0, %v738_v13  ;;  %v37_v13 = vld [vmem:[%s1317_s0 + $0x28] sm:$0xff] }
 0x3f1   :  { %683 = vmatmul.msk.f32.gmra.mxu0 %vm50_vm0, %v37_v13 }
 0x3f2   :  { %739 = vrcp.f32 %v334_v15  ;;  %v346_v22 = vand.u32 2147483648, %v334_v15  ;;  %v344_v24 = vand.u32 2147483647, %v334_v15  ;;  %vm340_vm15 = vweird.f32 %v334_v15 }
 0x3f4   :  { %v347_v26 = vor.u32 1.1754944e-38, %v346_v22  ;;  %vm345_vm2 = vcmp.eq.f32.partialorder %v344_v24, 8.507059e+37 }
 0x3f8   :  { %v740_v19 = vpop.eup %739 }
 0x3f9   :  { %v336_v20 = vmul.f32 %v740_v19, %v334_v15  ;;  %vm341_vm14 = vweird.f32 %v740_v19  ;;  %v38_v15 = vld [vmem:[%s1317_s0 + $0x30] sm:$0xff] }
 0x3fa   :  { %vm342_vm1 = vmor %vm340_vm15, %vm341_vm14  ;;  %684 = vmatmul.msk.f32.gmra.mxu0 %vm50_vm0, %v38_v15 }
 0x3fb   :  { %v337_v21 = vsub.f32 1.0, %v336_v20  ;;  %v43_v20 = vld [vmem:[%s1316_s1 + $0x18] sm:$0xff] }
 0x3fc   :  { %130 = vmatpush.msrb.mxu1 %v43_v20 }
 0x3fd   :  { %v338_v23 = vmul.f32 %v740_v19, %v337_v21  ;;  %v41_v21 = vld [vmem:[%s1316_s1 + $0x8] sm:$0xff] }
 0x3fe   :  { %131 = vmatpush.msrb.mxu1 %v41_v21 }
 0x3ff   :  { %v339_v25 = vadd.f32 %v740_v19, %v338_v23 }
 0x401   :  { %v343_v27 = vsel %vm342_vm1, %v740_v19, %v339_v25  ;;  %v39_v19 = vld [vmem:[%s1317_s0 + $0x38] sm:$0xff] }
 0x402   :  { %v348_v28 = vsel %vm345_vm2, %v347_v26, %v343_v27  ;;  %685 = vmatmul.msk.f32.vlgmr.msra.gmra.mxu1 %vm50_vm0, %v39_v19 }
 0x403   :  { %355 = vrot.lane.b32.xlu1 %v348_v28, %s774_s11  ;;  %350 = vrot.lane.b32.xlu0 %v348_v28, %s773_s10 }
 0x404   :  { %463 = vmatpush.msra.mxu1 %v859_v10 }
 0x406   :  { %464 = vmatpush.msra.mxu1 %v864_v11 }
 0x408   :  { %465 = vmatpush.msra.mxu1 %v871_v12 }
 0x40a   :  { %686 = vmatmul.msk.f32.vlgmr.msrb.gmra.mxu1 %vm50_vm0, %v834_v2 }
 0x40b   :  { %466 = vmatpush.msra.mxu1 %v879_v14 }
 0x40d   :  { %467 = vmatpush.msra.mxu1 %v887_v16 }
 0x40f   :  { %468 = vmatpush.msra.mxu1 %v895_v17 }
 0x411   :  { %469 = vmatpush.msra.mxu1 %v903_v18 }
 0x412   :  { %687 = vmatmul.msk.f32.gmra.mxu1 %vm50_vm0, %v988_v38 }
 0x413   :  { %470 = vmatpush.msra.mxu1 %v917_v29 }
 0x415   :  { %471 = vmatpush.msra.mxu1 %v924_v30 }
 0x417   :  { %472 = vmatpush.msra.mxu1 %v932_v31 }
 0x419   :  { %473 = vmatpush.msra.mxu1 %v939_v32 }
 0x41a   :  { %688 = vmatmul.msk.f32.gmra.mxu1 %vm50_vm0, %v1055_v7 }
 0x41b   :  { %474 = vmatpush.msra.mxu1 %v948_v33 }
 0x41d   :  { %475 = vmatpush.msra.mxu1 %v956_v34 }
 0x41f   :  { %476 = vmatpush.msra.mxu1 %v964_v35 }
 0x421   :  { %477 = vmatpush.msra.mxu1 %v972_v36 }
 0x422   :  { %689 = vmatmul.msk.f32.gmra.mxu1 %vm50_vm0, %v1070_v53 }
 0x423   :  { %478 = vmatpush.msra.mxu1 %v980_v37 }
 0x42a   :  { %690 = vmatmul.msk.f32.gmra.mxu1 %vm50_vm0, %v1085_v39 }
 0x432   :  { %691 = vmatmul.msk.f32.gmra.mxu1 %vm50_vm0, %v37_v13 }
 0x43a   :  { %692 = vmatmul.msk.f32.gmra.mxu1 %vm50_vm0, %v38_v15 }
 0x442   :  { %693 = vmatmul.msk.f32.gmra.mxu1 %vm50_vm0, %v39_v19 }
 0x46e   :  { %v107_v17 = vpop.f32.mrf.mxu0 }
 0x46f   :  { %v108_v30 = vadd.f32 %v107_v17, %v844_v4  ;;  %v625_v17 = vld [vmem:[%s1322_s7 + $0x68] sm:$0xff] }
 0x475   :  { %v351_v40 = vpop.permute.xlu0 %350  ;;  %v356_v47 = vpop.permute.xlu1 %355 }
 0x476   :  { %v352_v41 = vmul.f32 %v351_v40, %v328_v6 }
 0x477   :  { %v1151_v18 = vpop.f32.mrf.mxu0 }
 0x478   :  { %v353_v42 = vadd.f32 %v352_v41, %v102_v0 }
 0x47a   :  { %741 = vtanh.f32 %v353_v42 }
 0x47f   :  { %v1155_v32 = vpop.f32.mrf.mxu1 }
 0x480   :  { %v742_v43 = vpop.eup %741 }
 0x481   :  { %v357_v46 = vsub.f32 %v309_v45, %v742_v43 }
 0x483   :  { %v358_v48 = vmul.f32 %v357_v46, %v356_v47 }
 0x485   :  { %v359_v49 = vadd.f32 %v742_v43, %v358_v48 }
 0x487   :  { %701 = vmatmul.msk.f32.vlgmr.msrb.gmra.mxu3 %vm176_vm5, %v359_v49  ;;  %v360_v10 = vsel %vm176_vm5, %v359_v49, 0.0  ;;  %v133_v35 = vpop.f32.mrf.mxu1  ;;  %v47_v49 = vperm.slane %v841_v3, 1 }
 0x488   :  { %v620_v35 = vld [vmem:[%s1322_s7 + $0x40] sm:$0xff] }
 0x48f   :  { %v135_v38 = vpop.f32.mrf.mxu1 }
 0x490   :  { %v619_v38 = vld [vmem:[%s1322_s7 + $0x38] sm:$0xff] }
 0x497   :  { %v137_v26 = vpop.f32.mrf.mxu1 }
 0x49f   :  { %v139_v45 = vpop.f32.mrf.mxu1 }
 0x4a0   :  { %v615_v45 = vld [vmem:[%s1322_s7 + $0x18] sm:$0xff] }
 0x4a7   :  { %v141_v46 = vpop.f32.mrf.mxu1 }
 0x4a8   :  { %v614_v46 = vld [vmem:[%s1322_s7 + $0x10] sm:$0xff] }
 0x4af   :  { %v143_v47 = vpop.f32.mrf.mxu1 }
 0x4b0   :  { %v613_v47 = vld [vmem:[%s1322_s7 + $0x8] sm:$0xff] }
 0x4b7   :  { %v145_v48 = vpop.f32.mrf.mxu1 }
 0x4b8   :  { %v612_v48 = vld [vmem:[%s1322_s7] sm:$0xff] }
 0x4bf   :  { %v147_v50 = vpop.f32.mrf.mxu1 }
 0x50a   :  { %v378_v52 = vpop.f32.mrf.mxu3 }
 0x50b   :  { %v379_v54 = vadd.f32 %v849_v5, %v378_v52  ;;  %v1165_v52 = vld [vmem:[%s1321_s5] ss:$0 sm:$0xff] }
 0x50d   :  { %v381_v55 = vadd.f32 %v379_v54, %v105_v51 }
 0x50f   :  { %v702_v56 = vmul.f32 -1.442695, %v381_v55 }
 0x511   :  { %743 = vpow2.f32 %v702_v56 }
 0x517   :  { %v744_v57 = vpop.eup %743 }
 0x518   :  { %v385_v58 = vadd.f32 1.0, %v744_v57 }
 0x51a   :  { %745 = vrcp.f32 %v385_v58  ;;  %v397_v62 = vand.u32 2147483648, %v385_v58  ;;  %v395_v0 = vand.u32 2147483647, %v385_v58  ;;  %vm391_vm4 = vweird.f32 %v385_v58 }
 0x51c   :  { %v398_v6 = vor.u32 1.1754944e-38, %v397_v62  ;;  %vm396_vm7 = vcmp.eq.f32.partialorder %v395_v0, 8.507059e+37 }
 0x520   :  { %v746_v59 = vpop.eup %745 }
 0x521   :  { %v387_v60 = vmul.f32 %v746_v59, %v385_v58  ;;  %vm392_vm3 = vweird.f32 %v746_v59 }
 0x522   :  { %vm393_vm6 = vmor %vm391_vm4, %vm392_vm3 }
 0x523   :  { %v388_v61 = vsub.f32 1.0, %v387_v60 }
 0x525   :  { %v389_v63 = vmul.f32 %v746_v59, %v388_v61 }
 0x527   :  { %v390_v1 = vadd.f32 %v746_v59, %v389_v63 }
 0x529   :  { %v394_v8 = vsel %vm393_vm6, %v746_v59, %v390_v1 }
 0x52a   :  { %v399_v9 = vsel %vm396_vm7, %v398_v6, %v394_v8 }
 0x52b   :  { %406 = vrot.lane.b32.xlu0 %v399_v9, %s774_s11  ;;  %401 = vrot.lane.b32.xlu2 %v399_v9, %s773_s10 }
 0x585   :  { %v402_v22 = vpop.permute.xlu2 %401 }
 0x586   :  { %v403_v23 = vmul.f32 %v402_v22, %v379_v54 }
 0x588   :  { %v404_v24 = vadd.f32 %v403_v23, %v105_v51  ;;  %v1160_v51 = vadd.f32 %v147_v50, %v47_v49 }
 0x58a   :  { %747 = vtanh.f32 %v404_v24  ;;  %v565_v54 = vadd.f32 %v1165_v52, %v1160_v51 }
 0x58c   :  { %v709_v55 = vmul.f32 -1.442695, %v565_v54 }
 0x590   :  { %v748_v2 = vpop.eup %747 }
 0x591   :  { %v408_v11 = vsub.f32 %v360_v10, %v748_v2 }
 0x59d   :  { %v407_v12 = vpop.permute.xlu0 %406 }
 0x59e   :  { %v409_v14 = vmul.f32 %v408_v11, %v407_v12 }
 0x5a0   :  { %v1135_v16 = vadd.f32 %v748_v2, %v409_v14  ;;  %v1180_v2 = vadd.f32 %v1151_v18, %v844_v4  ;;  %v627_v14 = vld [vmem:[%s1322_s7 + $0x78] sm:$0xff] }
 0x5a1   :  { %628 = vmatpush.msra.mxu3 %v627_v14  ;;  %v610_v14 = vld [vmem:[%s1324_s6 + $0x70] sm:$0xff] }
 0x5a2   :  { %703 = vmatmul.msk.f32.vlgmr.msrb.gmra.mxu0 %vm176_vm5, %v1135_v16  ;;  %v411_v13 = vsel %vm176_vm5, %v1135_v16, 0.0  ;;  %v626_v16 = vld [vmem:[%s1322_s7 + $0x70] sm:$0xff] }
 0x5a3   :  { %629 = vmatpush.msra.mxu3 %v626_v16  ;;  %v609_v16 = vld [vmem:[%s1324_s6 + $0x68] sm:$0xff] }
 0x5a5   :  { %630 = vmatpush.msra.mxu3 %v625_v17  ;;  %v608_v17 = vld [vmem:[%s1324_s6 + $0x60] sm:$0xff] }
 0x61f   :  { %v429_v29 = vpop.f32.mrf.mxu0 }
 0x620   :  { %v430_v31 = vadd.f32 %v849_v5, %v429_v29  ;;  %v624_v29 = vld [vmem:[%s1322_s7 + $0x60] sm:$0xff] }
 0x621   :  { %631 = vmatpush.msra.mxu3 %v624_v29  ;;  %v606_v29 = vld [vmem:[%s1324_s6 + $0x50] sm:$0xff] }
 0x622   :  { %v432_v33 = vadd.f32 %v430_v31, %v108_v30 }
 0x624   :  { %v704_v34 = vmul.f32 -1.442695, %v432_v33  ;;  %v622_v33 = vld [vmem:[%s1322_s7 + $0x50] sm:$0xff] }
 0x626   :  { %749 = vpow2.f32 %v704_v34  ;;  %v621_v34 = vld [vmem:[%s1322_s7 + $0x48] sm:$0xff] }
 0x62c   :  { %v750_v36 = vpop.eup %749 }
 0x62d   :  { %v436_v37 = vadd.f32 1.0, %v750_v36 }
 0x62f   :  { %751 = vrcp.f32 %v436_v37  ;;  %v448_v27 = vand.u32 2147483648, %v436_v37  ;;  %v446_v39 = vand.u32 2147483647, %v436_v37  ;;  %vm442_vm8 = vweird.f32 %v436_v37 }
 0x630   :  { %753 = vpow2.f32 %v709_v55 }
 0x631   :  { %v449_v41 = vor.u32 1.1754944e-38, %v448_v27  ;;  %vm447_vm10 = vcmp.eq.f32.partialorder %v446_v39, 8.507059e+37 }
 0x635   :  { %v752_v7 = vpop.eup %751 }
 0x636   :  { %v438_v53 = vmul.f32 %v752_v7, %v436_v37  ;;  %vm443_vm0 = vweird.f32 %v752_v7  ;;  %v754_v56 = vpop.eup %753 }
 0x637   :  { %vm444_vm9 = vmor %vm442_vm8, %vm443_vm0  ;;  %v569_v57 = vadd.f32 1.0, %v754_v56 }
 0x638   :  { %v439_v25 = vsub.f32 1.0, %v438_v53  ;;  %v618_v53 = vld [vmem:[%s1322_s7 + $0x30] sm:$0xff] }
 0x639   :  { %755 = vrcp.f32 %v569_v57  ;;  %vm575_vm11 = vweird.f32 %v569_v57  ;;  %v581_v62 = vand.u32 2147483648, %v569_v57  ;;  %v579_v0 = vand.u32 2147483647, %v569_v57 }
 0x63a   :  { %v440_v28 = vmul.f32 %v752_v7, %v439_v25 }
 0x63b   :  { %v582_v6 = vor.u32 1.1754944e-38, %v581_v62  ;;  %vm580_vm14 = vcmp.eq.f32.partialorder %v579_v0, 8.507059e+37 }
 0x63c   :  { %v441_v40 = vadd.f32 %v752_v7, %v440_v28 }
 0x63e   :  { %v445_v42 = vsel %vm444_vm9, %v752_v7, %v441_v40 }
 0x63f   :  { %v450_v43 = vsel %vm447_vm10, %v449_v41, %v445_v42  ;;  %v756_v60 = vpop.eup %755  ;;  %v617_v42 = vld [vmem:[%s1322_s7 + $0x28] sm:$0xff] }
 0x640   :  { %457 = vrot.lane.b32.xlu2 %v450_v43, %s774_s11  ;;  %452 = vrot.lane.b32.xlu1 %v450_v43, %s773_s10  ;;  %v571_v61 = vmul.f32 %v756_v60, %v569_v57  ;;  %vm576_vm12 = vweird.f32 %v756_v60  ;;  %v616_v43 = vld [vmem:[%s1322_s7 + $0x20] sm:$0xff] }
 0x641   :  { %vm577_vm13 = vmor %vm575_vm11, %vm576_vm12 }
 0x642   :  { %v572_v63 = vsub.f32 1.0, %v571_v61 }
 0x644   :  { %v573_v1 = vmul.f32 %v756_v60, %v572_v63 }
 0x646   :  { %v574_v8 = vadd.f32 %v756_v60, %v573_v1 }
 0x648   :  { %v578_v15 = vsel %vm577_vm13, %v756_v60, %v574_v8  ;;  %v114_v8 = vadd.f32 %v1155_v32, %v844_v4  ;;  %v611_v32 = vld [vmem:[%s1324_s6 + $0x78] sm:$0xff] }
 0x649   :  { %v583_v20 = vsel %vm580_vm14, %v582_v6, %v578_v15  ;;  %648 = vmatpush.msra.mxu0 %v611_v32 }
 0x64a   :  { %585 = vrot.lane.b32.xlu2 %v583_v20, %s773_s10 }
 0x64b   :  { %649 = vmatpush.msra.mxu0 %v610_v14 }
 0x64d   :  { %650 = vmatpush.msra.mxu0 %v609_v16 }
 0x64f   :  { %651 = vmatpush.msra.mxu0 %v608_v17 }
 0x69a   :  { %v458_v21 = vpop.permute.xlu2 %457 }
 0x6a4   :  { %v586_v49 = vpop.permute.xlu2 %585 }
 0x6a5   :  { %v587_v50 = vmul.f32 %v1165_v52, %v586_v49 }
 0x6a7   :  { %v588_v54 = vadd.f32 %v587_v50, %v1160_v51 }
 0x6b2   :  { %v453_v58 = vpop.permute.xlu1 %452 }
 0x6b3   :  { %v454_v59 = vmul.f32 %v453_v58, %v430_v31  ;;  %v623_v31 = vld [vmem:[%s1322_s7 + $0x58] sm:$0xff] }
 0x6b4   :  { %632 = vmatpush.msra.mxu3 %v623_v31  ;;  %v604_v31 = vld [vmem:[%s1324_s6 + $0x40] sm:$0xff] }
 0x6b5   :  { %v455_v3 = vadd.f32 %v454_v59, %v108_v30 }
 0x6b6   :  { %633 = vmatpush.msra.mxu3 %v622_v33  ;;  %v603_v33 = vld [vmem:[%s1324_s6 + $0x38] sm:$0xff] }
 0x6b7   :  { %757 = vtanh.f32 %v455_v3 }
 0x6b8   :  { %634 = vmatpush.msra.mxu3 %v621_v34  ;;  %v602_v34 = vld [vmem:[%s1324_s6 + $0x30] sm:$0xff] }
 0x6ba   :  { %635 = vmatpush.msra.mxu3 %v620_v35  ;;  %v601_v35 = vld [vmem:[%s1324_s6 + $0x28] sm:$0xff] }
 0x6bc   :  { %636 = vmatpush.msra.mxu3 %v619_v38  ;;  %v598_v38 = vld [vmem:[%s1324_s6 + $0x10] sm:$0xff] }
 0x6bd   :  { %v758_v9 = vpop.eup %757 }
 0x6be   :  { %v459_v19 = vsub.f32 %v411_v13, %v758_v9  ;;  %637 = vmatpush.msra.mxu3 %v618_v53  ;;  %v596_v53 = vld [vmem:[%s1324_s6] sm:$0xff] }
 0x6c0   :  { %v460_v22 = vmul.f32 %v459_v19, %v458_v21  ;;  %638 = vmatpush.msra.mxu3 %v617_v42 }
 0x6c2   :  { %v1173_v23 = vadd.f32 %v758_v9, %v460_v22  ;;  %639 = vmatpush.msra.mxu3 %v616_v43 }
 0x6c4   :  { %705 = vmatmul.msk.f32.vlgmr.msra.gmra.mxu1 %vm176_vm5, %v1173_v23  ;;  %640 = vmatpush.msra.mxu3 %v615_v45  ;;  %v462_v63 = vsel %vm176_vm5, %v1173_v23, 0.0  ;;  %v718_v45 = vld [vmem:[%s1323_s8] ss:$0 sm:$0xff] }
 0x6c6   :  { %641 = vmatpush.msra.mxu3 %v614_v46 }
 0x6c8   :  { %642 = vmatpush.msra.mxu3 %v613_v47 }
 0x6ca   :  { %643 = vmatpush.msra.mxu3 %v612_v48 }
 0x741   :  { %v480_v24 = vpop.f32.mrf.mxu1 }
 0x742   :  { %v1183_v10 = vadd.f32 %v849_v5, %v480_v24 }
 0x744   :  { %v483_v11 = vadd.f32 %v1183_v10, %v1180_v2 }
 0x746   :  { %v706_v12 = vmul.f32 -1.442695, %v483_v11 }
 0x748   :  { %759 = vpow2.f32 %v706_v12 }
 0x74e   :  { %v760_v18 = vpop.eup %759 }
 0x74f   :  { %v487_v30 = vadd.f32 1.0, %v760_v18  ;;  %v607_v18 = vld [vmem:[%s1324_s6 + $0x58] sm:$0xff] }
 0x750   :  { %652 = vmatpush.msra.mxu0 %v607_v18 }
 0x751   :  { %761 = vrcp.f32 %v487_v30  ;;  %v499_v25 = vand.u32 2147483648, %v487_v30  ;;  %v497_v27 = vand.u32 2147483647, %v487_v30  ;;  %vm493_vm1 = vweird.f32 %v487_v30 }
 0x752   :  { %763 = vtanh.f32 %v588_v54  ;;  %653 = vmatpush.msra.mxu0 %v606_v29 }
 0x753   :  { %v500_v39 = vor.u32 1.1754944e-38, %v499_v25  ;;  %vm498_vm3 = vcmp.eq.f32.partialorder %v497_v27, 8.507059e+37 }
 0x757   :  { %v762_v36 = vpop.eup %761 }
 0x758   :  { %v489_v37 = vmul.f32 %v762_v36, %v487_v30  ;;  %vm494_vm15 = vweird.f32 %v762_v36  ;;  %v764_v59 = vpop.eup %763  ;;  %v605_v30 = vld [vmem:[%s1324_s6 + $0x48] sm:$0xff] }
 0x759   :  { %vm495_vm2 = vmor %vm493_vm1, %vm494_vm15  ;;  %v592_v60 = vsub.f32 0.0, %v764_v59  ;;  %654 = vmatpush.msra.mxu0 %v605_v30 }
 0x75a   :  { %v490_v7 = vsub.f32 1.0, %v489_v37  ;;  %v599_v37 = vld [vmem:[%s1324_s6 + $0x18] sm:$0xff] }
 0x75b   :  { %655 = vmatpush.msra.mxu0 %v604_v31 }
 0x75c   :  { %v491_v26 = vmul.f32 %v762_v36, %v490_v7  ;;  %v597_v7 = vld [vmem:[%s1324_s6 + $0x8] sm:$0xff] }
 0x75d   :  { %656 = vmatpush.msra.mxu0 %v603_v33 }
 0x75e   :  { %v492_v28 = vadd.f32 %v762_v36, %v491_v26 }
 0x75f   :  { %657 = vmatpush.msra.mxu0 %v602_v34 }
 0x760   :  { %v496_v40 = vsel %vm495_vm2, %v762_v36, %v492_v28  ;;  %v600_v36 = vld [vmem:[%s1324_s6 + $0x20] sm:$0xff] }
 0x761   :  { %v501_v41 = vsel %vm498_vm3, %v500_v39, %v496_v40  ;;  %658 = vmatpush.msra.mxu0 %v601_v35 }
 0x762   :  { %508 = vrot.lane.b32.xlu1 %v501_v41, %s774_s11  ;;  %503 = vrot.lane.b32.xlu0 %v501_v41, %s773_s10 }
 0x763   :  { %659 = vmatpush.msra.mxu0 %v600_v36 }
 0x765   :  { %660 = vmatpush.msra.mxu0 %v599_v37 }
 0x767   :  { %661 = vmatpush.msra.mxu0 %v598_v38 }
 0x769   :  { %662 = vmatpush.msra.mxu0 %v597_v7 }
 0x76a   :  { %590 = vrot.lane.b32.xlu1 %v583_v20, %s774_s11 }
 0x76b   :  { %663 = vmatpush.msra.mxu0 %v596_v53 }
 0x7d4   :  { %v509_v55 = vpop.permute.xlu1 %508  ;;  %v504_v56 = vpop.permute.xlu0 %503 }
 0x7d5   :  { %v505_v57 = vmul.f32 %v504_v56, %v1183_v10 }
 0x7d7   :  { %v506_v58 = vadd.f32 %v505_v57, %v1180_v2 }
 0x7d9   :  { %765 = vtanh.f32 %v506_v58 }
 0x7dc   :  { %v591_v3 = vpop.permute.xlu1 %590 }
 0x7dd   :  { %v593_v61 = vmul.f32 %v592_v60, %v591_v3 }
 0x7df   :  { %v766_v62 = vpop.eup %765  ;;  %v594_v52 = vadd.f32 %v764_v59, %v593_v61 }
 0x7e0   :  { %v510_v0 = vsub.f32 %v462_v63, %v766_v62 }
 0x7e1   :  { %710 = vmatmul.msk.f32.vlgmr.msra.gmra.mxu3 %vm176_vm5, %v594_v52 }
 0x7e2   :  { %v511_v51 = vmul.f32 %v510_v0, %v509_v55 }
 0x7e4   :  { %v1247_v1 = vadd.f32 %v766_v62, %v511_v51 }
 0x7e6   :  { %707 = vmatmul.msk.f32.vlgmr.msra.gmra.mxu2 %vm176_vm5, %v1247_v1  ;;  %v513_v39 = vsel %vm176_vm5, %v1247_v1, 0.0 }
 0x864   :  { %v645_v46 = vpop.f32.mrf.mxu3 }
 0x869   :  { %v531_v6 = vpop.f32.mrf.mxu2 }
 0x86a   :  { %v532_v9 = vadd.f32 %v849_v5, %v531_v6 }
 0x86c   :  { %v534_v13 = vadd.f32 %v532_v9, %v114_v8 }
 0x86e   :  { %v708_v15 = vmul.f32 -1.442695, %v534_v13 }
 0x870   :  { %767 = vpow2.f32 %v708_v15 }
 0x876   :  { %v768_v19 = vpop.eup %767 }
 0x877   :  { %v538_v20 = vadd.f32 1.0, %v768_v19 }
 0x879   :  { %769 = vrcp.f32 %v538_v20  ;;  %v550_v24 = vand.u32 2147483648, %v538_v20  ;;  %v548_v10 = vand.u32 2147483647, %v538_v20  ;;  %vm544_vm6 = vweird.f32 %v538_v20 }
 0x87b   :  { %v551_v12 = vor.u32 1.1754944e-38, %v550_v24  ;;  %vm549_vm0 = vcmp.eq.f32.partialorder %v548_v10, 8.507059e+37 }
 0x87f   :  { %v770_v21 = vpop.eup %769 }
 0x880   :  { %v540_v22 = vmul.f32 %v770_v21, %v538_v20  ;;  %vm545_vm4 = vweird.f32 %v770_v21 }
 0x881   :  { %vm546_vm7 = vmor %vm544_vm6, %vm545_vm4 }
 0x882   :  { %v541_v23 = vsub.f32 1.0, %v540_v22 }
 0x884   :  { %v542_v2 = vmul.f32 %v770_v21, %v541_v23 }
 0x886   :  { %v543_v11 = vadd.f32 %v770_v21, %v542_v2 }
 0x888   :  { %v547_v4 = vsel %vm546_vm7, %v770_v21, %v543_v11 }
 0x889   :  { %v552_v5 = vsel %vm549_vm0, %v551_v12, %v547_v4 }
 0x88a   :  { %559 = vrot.lane.b32.xlu2 %v552_v5, %s774_s11  ;;  %554 = vrot.lane.b32.xlu0 %v552_v5, %s773_s10 }
 0x8e4   :  { %v560_v41 = vpop.permute.xlu2 %559 }
 0x8fc   :  { %v555_v25 = vpop.permute.xlu0 %554 }
 0x8fd   :  { %v556_v26 = vmul.f32 %v555_v25, %v532_v9 }
 0x8ff   :  { %v557_v27 = vadd.f32 %v556_v26, %v114_v8 }
 0x901   :  { %771 = vtanh.f32 %v557_v27 }
 0x907   :  { %v772_v28 = vpop.eup %771 }
 0x908   :  { %v561_v40 = vsub.f32 %v513_v39, %v772_v28 }
 0x90a   :  { %v562_v42 = vmul.f32 %v561_v40, %v560_v41 }
 0x90c   :  { %v563_v43 = vadd.f32 %v772_v28, %v562_v42 }
 0x90e   :  { %711 = vmatmul.msk.f32.vlgmr.msra.gmra.mxu0 %vm176_vm5, %v563_v43 }
 0x98b   :  { %v665_v47 = vpop.f32.mrf.mxu0 }
 0x98c   :  { %v666_v48 = vadd.f32 %v665_v47, %v645_v46 }
 0x98e   :  { %v672_v49 = vadd.f32 %v718_v45, %v666_v48 }
 0x990   :  { %673 = vst [vmem:[%s1325_s9] sm:$0xff] %v672_v49 }

</bundles_post_ra>
